<compile_context>
chip_gen: v7x
topology: tpu7x:2x2x1
jax: 0.10.0
libtpu: 0.0.40
codegen_flags: <defaults>
</compile_context>

<pallas_src>
import jax
import jax.numpy as jnp
from jax.experimental import pallas as pl
from jax.experimental.pallas import tpu as pltpu

LN_EPS = 1e-5      # nn.LayerNorm default eps
L2_EPS = 1e-12     # F.normalize default eps


def _layer_norm_silu(h, g, beta):
    """LayerNorm (biased variance, torch semantics) followed by SiLU."""
    mu = jnp.mean(h, axis=-1, keepdims=True)
    var = jnp.mean((h - mu) ** 2, axis=-1, keepdims=True)
    hn = (h - mu) * jax.lax.rsqrt(var + LN_EPS) * g + beta
    return hn * jax.nn.sigmoid(hn)


# ----------------------------------------------------------------------------
# Fused kernel: N x HiddenBlock encoders -> attention -> decoder HiddenBlock
# ----------------------------------------------------------------------------
def _make_fused_kernel(N):
    def kernel(*refs):
        x_refs = refs[:N]                                  # N x (B, d_n)
        enc_refs = refs[N:7 * N]                           # per branch: w1,b1,g,beta,w2,b2
        aw1_ref, ab1_ref, aw2_ref = refs[7 * N:7 * N + 3]  # (H,H), (1,H), (1,H) row
        (dw1_ref, db1_ref, dg_ref,
         dbeta_ref, dw2_ref, db2_ref) = refs[7 * N + 3:7 * N + 9]
        out_ref, att_ref = refs[7 * N + 9], refs[7 * N + 10]

        B = x_refs[0].shape[0]

        # ---- encoders: Linear -> LayerNorm -> SiLU -> Dropout(id) -> Linear ----
        encs = []
        for n in range(N):
            w1, b1, g, beta, w2, b2 = (r[...] for r in enc_refs[6 * n:6 * n + 6])
            h = jnp.dot(x_refs[n][...], w1, preferred_element_type=jnp.float32) + b1
            a = _layer_norm_silu(h, g, beta)
            encs.append(jnp.dot(a, w2, preferred_element_type=jnp.float32) + b2)

        # ---- attention over branches, batched along the sublane axis ----------
        xs = jnp.concatenate(encs, axis=0)                 # (N*B, H)
        nrm = jnp.sqrt(jnp.sum(xs * xs, axis=-1, keepdims=True))
        xn = xs / jnp.maximum(nrm, L2_EPS)                 # F.normalize(dim=-1)
        t = jnp.tanh(jnp.dot(xn, aw1_ref[...],
                             preferred_element_type=jnp.float32) + ab1_ref[...])
        # second attention Linear (H -> 1, no bias): VPU multiply + lane reduce
        s = jnp.sum(t * aw2_ref[...], axis=-1, keepdims=True)   # (N*B, 1)

        # per-branch mean over batch -> N scalar logits (kept as (1,1) blocks)
        logits = [jnp.mean(s[n * B:(n + 1) * B], axis=0, keepdims=True)
                  for n in range(N)]

        # softmax over the N branch logits
        m = logits[0]
        for l in logits[1:]:
            m = jnp.maximum(m, l)
        es = [jnp.exp(l - m) for l in logits]
        denom = es[0]
        for e in es[1:]:
            denom = denom + e
        inv_denom = 1.0 / denom
        atts = [e * inv_denom for e in es]                 # N x (1,1)

        # ---- decoder: single (B, N*H) @ (N*H, H) matmul -----------------------
        weighted = jnp.concatenate([atts[n] * encs[n] for n in range(N)], axis=-1)
        h = jnp.dot(weighted, dw1_ref[...],
                    preferred_element_type=jnp.float32) + db1_ref[...]
        act = _layer_norm_silu(h, dg_ref[...], dbeta_ref[...])
        out = jnp.dot(act, dw2_ref[...],
                      preferred_element_type=jnp.float32) + db2_ref[...]
        out_ref[...] = out.astype(out_ref.dtype)

        # attention coefficients as a (1, N) row (single lane concat + store)
        att_ref[...] = jnp.concatenate(atts, axis=-1).astype(att_ref.dtype)

    return kernel


def aggregator_block_forward(x_list, enc_params_list, att_params, dec_params):
    N = len(x_list)
    B = x_list[0].shape[0]
    aw1, ab1, aw2 = att_params                    # aw2 stored as (H, 1)
    dw1, db1, dg, dbeta, dw2, db2 = dec_params    # dw1 stored flat as (N*H, H)
    H = aw1.shape[0]
    out_dim = dw2.shape[1]

    enc_flat = [p for params in enc_params_list for p in params]
    args = (*x_list, *enc_flat,
            aw1, ab1, aw2.reshape(1, H),          # pass aw2 as a (1, H) row
            dw1, db1, dg, dbeta, dw2, db2)

    out, att = pl.pallas_call(
        _make_fused_kernel(N),
        out_shape=(jax.ShapeDtypeStruct((B, out_dim), jnp.float32),
                   jax.ShapeDtypeStruct((1, N), jnp.float32)),
        in_specs=[pl.BlockSpec(memory_space=pltpu.MemorySpace.VMEM)] * len(args),
        out_specs=(pl.BlockSpec(memory_space=pltpu.MemorySpace.VMEM),
                   pl.BlockSpec(memory_space=pltpu.MemorySpace.VMEM)),
    )(*args)
    return out, att[0]                            # (B, out_dim), (N,)


# ----------------------------------------------------------------------------
# Deterministic parameter init + pure-JAX reference
# ----------------------------------------------------------------------------
def _init_linear(key, din, dout, bias=True):
    k1, k2 = jax.random.split(key)
    lim = 1.0 / (din ** 0.5)
    w = jax.random.uniform(k1, (din, dout), jnp.float32, -lim, lim)
    b = jax.random.uniform(k2, (1, dout), jnp.float32, -lim, lim) if bias else None
    return w, b


def _init_hidden_block(key, din, dh, dout):
    k1, k2 = jax.random.split(key)
    w1, b1 = _init_linear(k1, din, dh)
    g = jnp.ones((1, dh), jnp.float32)
    beta = jnp.zeros((1, dh), jnp.float32)
    w2, b2 = _init_linear(k2, dh, dout)
    return (w1, b1, g, beta, w2, b2)


def _reference(x_list, enc_params_list, att_params, dec_params):
    def hb(x, p):
        w1, b1, g, beta, w2, b2 = p
        h = x @ w1 + b1
        mu = h.mean(-1, keepdims=True)
        var = ((h - mu) ** 2).mean(-1, keepdims=True)
        hn = (h - mu) / jnp.sqrt(var + LN_EPS) * g + beta
        act = hn * jax.nn.sigmoid(hn)
        return act @ w2 + b2

    encs = [hb(x, p) for x, p in zip(x_list, enc_params_list)]
    xs = jnp.stack(encs, axis=1)                              # (B, N, H)
    nrm = jnp.sqrt(jnp.sum(xs * xs, -1, keepdims=True))
    xn = xs / jnp.maximum(nrm, L2_EPS)
    aw1, ab1, aw2 = att_params
    s = jnp.tanh(xn @ aw1 + ab1) @ aw2                        # (B, N, 1)
    logits = s.mean(0)                                        # (N, 1)
    att = jax.nn.softmax(logits, axis=0)                      # (N, 1)
    w = att[None] * xs                                        # (B, N, H)
    flat = w.reshape(xs.shape[0], -1)                         # (B, N*H)
    return hb(flat, dec_params), att[:, 0]


if __name__ == "__main__":
    key = jax.random.PRNGKey(0)
    B = 8
    input_dim_list = [64, 32, 48]
    N = len(input_dim_list)
    hidden = min(input_dim_list)   # 32
    out_dim = min(input_dim_list)  # 32

    keys = jax.random.split(key, 3 + N + N)
    # inputs
    x_list = [jax.random.normal(keys[i], (B, d), jnp.float32)
              for i, d in enumerate(input_dim_list)]
    # encoders
    enc_params_list = [_init_hidden_block(keys[N + i], d, hidden, hidden)
                       for i, d in enumerate(input_dim_list)]
    # attention: Linear(H,H) -> Tanh -> Linear(H,1, bias=False)
    aw1, ab1 = _init_linear(keys[2 * N], hidden, hidden)
    aw2, _ = _init_linear(keys[2 * N + 1], hidden, 1, bias=False)
    att_params = (aw1, ab1, aw2)
    # decoder HiddenBlock(N*H -> H -> out); first weight kept flat as (N*H, H)
    dec_params = _init_hidden_block(keys[2 * N + 2], N * hidden, hidden, out_dim)

    out, coeffs = aggregator_block_forward(x_list, enc_params_list, att_params, dec_params)
    out, coeffs = jax.block_until_ready((out, coeffs))

    ref_out, ref_coeffs = _reference(x_list, enc_params_list, att_params, dec_params)
    assert out.shape == (B, out_dim) and coeffs.shape == (N,)
    assert jnp.allclose(out, ref_out, atol=1e-4, rtol=1e-4)
    assert jnp.allclose(coeffs, ref_coeffs, atol=1e-5, rtol=1e-5)
    print("KERNEL_OK")
</pallas_src>

<mosaic_0001>
module attributes {stable_mosaic.version = 11 : i64} {
  func.func @kernel(%arg0: memref<8x64xf32, #tpu.memory_space<vmem>>, %arg1: memref<8x32xf32, #tpu.memory_space<vmem>>, %arg2: memref<8x48xf32, #tpu.memory_space<vmem>>, %arg3: memref<64x32xf32, #tpu.memory_space<vmem>>, %arg4: memref<1x32xf32, #tpu.memory_space<vmem>>, %arg5: memref<1x32xf32, #tpu.memory_space<vmem>>, %arg6: memref<1x32xf32, #tpu.memory_space<vmem>>, %arg7: memref<32x32xf32, #tpu.memory_space<vmem>>, %arg8: memref<1x32xf32, #tpu.memory_space<vmem>>, %arg9: memref<32x32xf32, #tpu.memory_space<vmem>>, %arg10: memref<1x32xf32, #tpu.memory_space<vmem>>, %arg11: memref<1x32xf32, #tpu.memory_space<vmem>>, %arg12: memref<1x32xf32, #tpu.memory_space<vmem>>, %arg13: memref<32x32xf32, #tpu.memory_space<vmem>>, %arg14: memref<1x32xf32, #tpu.memory_space<vmem>>, %arg15: memref<48x32xf32, #tpu.memory_space<vmem>>, %arg16: memref<1x32xf32, #tpu.memory_space<vmem>>, %arg17: memref<1x32xf32, #tpu.memory_space<vmem>>, %arg18: memref<1x32xf32, #tpu.memory_space<vmem>>, %arg19: memref<32x32xf32, #tpu.memory_space<vmem>>, %arg20: memref<1x32xf32, #tpu.memory_space<vmem>>, %arg21: memref<32x32xf32, #tpu.memory_space<vmem>>, %arg22: memref<1x32xf32, #tpu.memory_space<vmem>>, %arg23: memref<1x32xf32, #tpu.memory_space<vmem>>, %arg24: memref<96x32xf32, #tpu.memory_space<vmem>>, %arg25: memref<1x32xf32, #tpu.memory_space<vmem>>, %arg26: memref<1x32xf32, #tpu.memory_space<vmem>>, %arg27: memref<1x32xf32, #tpu.memory_space<vmem>>, %arg28: memref<32x32xf32, #tpu.memory_space<vmem>>, %arg29: memref<1x32xf32, #tpu.memory_space<vmem>>, %arg30: memref<8x32xf32, #tpu.memory_space<vmem>>, %arg31: memref<1x3xf32, #tpu.memory_space<vmem>>) attributes {dimension_semantics = [], scalar_prefetch = 0 : i64, scratch_operands = 0 : i64, tpu.core_type = #tpu.core_type<tc>} {
    %c0 = arith.constant 0 : index
    %c0_0 = arith.constant 0 : index
    %0 = vector.load %arg3[%c0, %c0_0] : memref<64x32xf32, #tpu.memory_space<vmem>>, vector<64x32xf32>
    %c0_1 = arith.constant 0 : index
    %c0_2 = arith.constant 0 : index
    %1 = vector.load %arg4[%c0_1, %c0_2] : memref<1x32xf32, #tpu.memory_space<vmem>>, vector<1x32xf32>
    %c0_3 = arith.constant 0 : index
    %c0_4 = arith.constant 0 : index
    %2 = vector.load %arg5[%c0_3, %c0_4] : memref<1x32xf32, #tpu.memory_space<vmem>>, vector<1x32xf32>
    %c0_5 = arith.constant 0 : index
    %c0_6 = arith.constant 0 : index
    %3 = vector.load %arg6[%c0_5, %c0_6] : memref<1x32xf32, #tpu.memory_space<vmem>>, vector<1x32xf32>
    %c0_7 = arith.constant 0 : index
    %c0_8 = arith.constant 0 : index
    %4 = vector.load %arg7[%c0_7, %c0_8] : memref<32x32xf32, #tpu.memory_space<vmem>>, vector<32x32xf32>
    %c0_9 = arith.constant 0 : index
    %c0_10 = arith.constant 0 : index
    %5 = vector.load %arg8[%c0_9, %c0_10] : memref<1x32xf32, #tpu.memory_space<vmem>>, vector<1x32xf32>
    %c0_11 = arith.constant 0 : index
    %c0_12 = arith.constant 0 : index
    %6 = vector.load %arg0[%c0_11, %c0_12] : memref<8x64xf32, #tpu.memory_space<vmem>>, vector<8x64xf32>
    %cst = arith.constant dense<0.000000e+00> : vector<8x32xf32>
    %7 = tpu.matmul %6, %0, %cst {dimension_numbers = #tpu.dot_dimension_numbers<[1], [0], [0], [1], [0, 0, 1, 1], [], []>} : vector<8x64xf32>, vector<64x32xf32>, vector<8x32xf32> -> vector<8x32xf32>
    %8 = vector.broadcast %1 : vector<1x32xf32> to vector<8x32xf32>
    %9 = arith.addf %7, %8 : vector<8x32xf32>
    %cst_13 = arith.constant dense<0.000000e+00> : vector<8xf32>
    %10 = vector.multi_reduction <add>, %9, %cst_13 [1] : vector<8x32xf32> to vector<8xf32>
    %11 = vector.shape_cast %10 : vector<8xf32> to vector<8x1xf32>
    %cst_14 = arith.constant 3.200000e+01 : f32
    %12 = vector.broadcast %cst_14 : f32 to vector<8x1xf32>
    %13 = arith.divf %11, %12 : vector<8x1xf32>
    %14 = vector.broadcast %13 : vector<8x1xf32> to vector<8x32xf32>
    %15 = arith.subf %9, %14 : vector<8x32xf32>
    %16 = arith.mulf %15, %15 : vector<8x32xf32>
    %cst_15 = arith.constant dense<0.000000e+00> : vector<8xf32>
    %17 = vector.multi_reduction <add>, %16, %cst_15 [1] : vector<8x32xf32> to vector<8xf32>
    %18 = vector.shape_cast %17 : vector<8xf32> to vector<8x1xf32>
    %cst_16 = arith.constant 3.200000e+01 : f32
    %19 = vector.broadcast %cst_16 : f32 to vector<8x1xf32>
    %20 = arith.divf %18, %19 : vector<8x1xf32>
    %21 = vector.broadcast %13 : vector<8x1xf32> to vector<8x32xf32>
    %22 = arith.subf %9, %21 : vector<8x32xf32>
    %cst_17 = arith.constant 9.99999974E-6 : f32
    %23 = vector.broadcast %cst_17 : f32 to vector<8x1xf32>
    %24 = arith.addf %20, %23 : vector<8x1xf32>
    %25 = math.rsqrt %24 : vector<8x1xf32>
    %26 = vector.broadcast %25 : vector<8x1xf32> to vector<8x32xf32>
    %27 = arith.mulf %22, %26 : vector<8x32xf32>
    %28 = vector.broadcast %2 : vector<1x32xf32> to vector<8x32xf32>
    %29 = arith.mulf %27, %28 : vector<8x32xf32>
    %30 = vector.broadcast %3 : vector<1x32xf32> to vector<8x32xf32>
    %31 = arith.addf %29, %30 : vector<8x32xf32>
    %32 = arith.negf %31 : vector<8x32xf32>
    %33 = math.exp %32 : vector<8x32xf32>
    %cst_18 = arith.constant 1.000000e+00 : f32
    %34 = vector.broadcast %cst_18 : f32 to vector<8x32xf32>
    %35 = arith.addf %34, %33 : vector<8x32xf32>
    %36 = arith.divf %34, %35 : vector<8x32xf32>
    %37 = arith.mulf %31, %36 : vector<8x32xf32>
    %cst_19 = arith.constant dense<0.000000e+00> : vector<8x32xf32>
    %38 = tpu.matmul %37, %4, %cst_19 {dimension_numbers = #tpu.dot_dimension_numbers<[1], [0], [0], [1], [0, 0, 1, 1], [], []>} : vector<8x32xf32>, vector<32x32xf32>, vector<8x32xf32> -> vector<8x32xf32>
    %39 = vector.broadcast %5 : vector<1x32xf32> to vector<8x32xf32>
    %40 = arith.addf %38, %39 : vector<8x32xf32>
    %c0_20 = arith.constant 0 : index
    %c0_21 = arith.constant 0 : index
    %41 = vector.load %arg9[%c0_20, %c0_21] : memref<32x32xf32, #tpu.memory_space<vmem>>, vector<32x32xf32>
    %c0_22 = arith.constant 0 : index
    %c0_23 = arith.constant 0 : index
    %42 = vector.load %arg10[%c0_22, %c0_23] : memref<1x32xf32, #tpu.memory_space<vmem>>, vector<1x32xf32>
    %c0_24 = arith.constant 0 : index
    %c0_25 = arith.constant 0 : index
    %43 = vector.load %arg11[%c0_24, %c0_25] : memref<1x32xf32, #tpu.memory_space<vmem>>, vector<1x32xf32>
    %c0_26 = arith.constant 0 : index
    %c0_27 = arith.constant 0 : index
    %44 = vector.load %arg12[%c0_26, %c0_27] : memref<1x32xf32, #tpu.memory_space<vmem>>, vector<1x32xf32>
    %c0_28 = arith.constant 0 : index
    %c0_29 = arith.constant 0 : index
    %45 = vector.load %arg13[%c0_28, %c0_29] : memref<32x32xf32, #tpu.memory_space<vmem>>, vector<32x32xf32>
    %c0_30 = arith.constant 0 : index
    %c0_31 = arith.constant 0 : index
    %46 = vector.load %arg14[%c0_30, %c0_31] : memref<1x32xf32, #tpu.memory_space<vmem>>, vector<1x32xf32>
    %c0_32 = arith.constant 0 : index
    %c0_33 = arith.constant 0 : index
    %47 = vector.load %arg1[%c0_32, %c0_33] : memref<8x32xf32, #tpu.memory_space<vmem>>, vector<8x32xf32>
    %cst_34 = arith.constant dense<0.000000e+00> : vector<8x32xf32>
    %48 = tpu.matmul %47, %41, %cst_34 {dimension_numbers = #tpu.dot_dimension_numbers<[1], [0], [0], [1], [0, 0, 1, 1], [], []>} : vector<8x32xf32>, vector<32x32xf32>, vector<8x32xf32> -> vector<8x32xf32>
    %49 = vector.broadcast %42 : vector<1x32xf32> to vector<8x32xf32>
    %50 = arith.addf %48, %49 : vector<8x32xf32>
    %cst_35 = arith.constant dense<0.000000e+00> : vector<8xf32>
    %51 = vector.multi_reduction <add>, %50, %cst_35 [1] : vector<8x32xf32> to vector<8xf32>
    %52 = vector.shape_cast %51 : vector<8xf32> to vector<8x1xf32>
    %cst_36 = arith.constant 3.200000e+01 : f32
    %53 = vector.broadcast %cst_36 : f32 to vector<8x1xf32>
    %54 = arith.divf %52, %53 : vector<8x1xf32>
    %55 = vector.broadcast %54 : vector<8x1xf32> to vector<8x32xf32>
    %56 = arith.subf %50, %55 : vector<8x32xf32>
    %57 = arith.mulf %56, %56 : vector<8x32xf32>
    %cst_37 = arith.constant dense<0.000000e+00> : vector<8xf32>
    %58 = vector.multi_reduction <add>, %57, %cst_37 [1] : vector<8x32xf32> to vector<8xf32>
    %59 = vector.shape_cast %58 : vector<8xf32> to vector<8x1xf32>
    %cst_38 = arith.constant 3.200000e+01 : f32
    %60 = vector.broadcast %cst_38 : f32 to vector<8x1xf32>
    %61 = arith.divf %59, %60 : vector<8x1xf32>
    %62 = vector.broadcast %54 : vector<8x1xf32> to vector<8x32xf32>
    %63 = arith.subf %50, %62 : vector<8x32xf32>
    %cst_39 = arith.constant 9.99999974E-6 : f32
    %64 = vector.broadcast %cst_39 : f32 to vector<8x1xf32>
    %65 = arith.addf %61, %64 : vector<8x1xf32>
    %66 = math.rsqrt %65 : vector<8x1xf32>
    %67 = vector.broadcast %66 : vector<8x1xf32> to vector<8x32xf32>
    %68 = arith.mulf %63, %67 : vector<8x32xf32>
    %69 = vector.broadcast %43 : vector<1x32xf32> to vector<8x32xf32>
    %70 = arith.mulf %68, %69 : vector<8x32xf32>
    %71 = vector.broadcast %44 : vector<1x32xf32> to vector<8x32xf32>
    %72 = arith.addf %70, %71 : vector<8x32xf32>
    %73 = arith.negf %72 : vector<8x32xf32>
    %74 = math.exp %73 : vector<8x32xf32>
    %cst_40 = arith.constant 1.000000e+00 : f32
    %75 = vector.broadcast %cst_40 : f32 to vector<8x32xf32>
    %76 = arith.addf %75, %74 : vector<8x32xf32>
    %77 = arith.divf %75, %76 : vector<8x32xf32>
    %78 = arith.mulf %72, %77 : vector<8x32xf32>
    %cst_41 = arith.constant dense<0.000000e+00> : vector<8x32xf32>
    %79 = tpu.matmul %78, %45, %cst_41 {dimension_numbers = #tpu.dot_dimension_numbers<[1], [0], [0], [1], [0, 0, 1, 1], [], []>} : vector<8x32xf32>, vector<32x32xf32>, vector<8x32xf32> -> vector<8x32xf32>
    %80 = vector.broadcast %46 : vector<1x32xf32> to vector<8x32xf32>
    %81 = arith.addf %79, %80 : vector<8x32xf32>
    %c0_42 = arith.constant 0 : index
    %c0_43 = arith.constant 0 : index
    %82 = vector.load %arg15[%c0_42, %c0_43] : memref<48x32xf32, #tpu.memory_space<vmem>>, vector<48x32xf32>
    %c0_44 = arith.constant 0 : index
    %c0_45 = arith.constant 0 : index
    %83 = vector.load %arg16[%c0_44, %c0_45] : memref<1x32xf32, #tpu.memory_space<vmem>>, vector<1x32xf32>
    %c0_46 = arith.constant 0 : index
    %c0_47 = arith.constant 0 : index
    %84 = vector.load %arg17[%c0_46, %c0_47] : memref<1x32xf32, #tpu.memory_space<vmem>>, vector<1x32xf32>
    %c0_48 = arith.constant 0 : index
    %c0_49 = arith.constant 0 : index
    %85 = vector.load %arg18[%c0_48, %c0_49] : memref<1x32xf32, #tpu.memory_space<vmem>>, vector<1x32xf32>
    %c0_50 = arith.constant 0 : index
    %c0_51 = arith.constant 0 : index
    %86 = vector.load %arg19[%c0_50, %c0_51] : memref<32x32xf32, #tpu.memory_space<vmem>>, vector<32x32xf32>
    %c0_52 = arith.constant 0 : index
    %c0_53 = arith.constant 0 : index
    %87 = vector.load %arg20[%c0_52, %c0_53] : memref<1x32xf32, #tpu.memory_space<vmem>>, vector<1x32xf32>
    %c0_54 = arith.constant 0 : index
    %c0_55 = arith.constant 0 : index
    %88 = vector.load %arg2[%c0_54, %c0_55] : memref<8x48xf32, #tpu.memory_space<vmem>>, vector<8x48xf32>
    %cst_56 = arith.constant dense<0.000000e+00> : vector<8x32xf32>
    %89 = tpu.matmul %88, %82, %cst_56 {dimension_numbers = #tpu.dot_dimension_numbers<[1], [0], [0], [1], [0, 0, 1, 1], [], []>} : vector<8x48xf32>, vector<48x32xf32>, vector<8x32xf32> -> vector<8x32xf32>
    %90 = vector.broadcast %83 : vector<1x32xf32> to vector<8x32xf32>
    %91 = arith.addf %89, %90 : vector<8x32xf32>
    %cst_57 = arith.constant dense<0.000000e+00> : vector<8xf32>
    %92 = vector.multi_reduction <add>, %91, %cst_57 [1] : vector<8x32xf32> to vector<8xf32>
    %93 = vector.shape_cast %92 : vector<8xf32> to vector<8x1xf32>
    %cst_58 = arith.constant 3.200000e+01 : f32
    %94 = vector.broadcast %cst_58 : f32 to vector<8x1xf32>
    %95 = arith.divf %93, %94 : vector<8x1xf32>
    %96 = vector.broadcast %95 : vector<8x1xf32> to vector<8x32xf32>
    %97 = arith.subf %91, %96 : vector<8x32xf32>
    %98 = arith.mulf %97, %97 : vector<8x32xf32>
    %cst_59 = arith.constant dense<0.000000e+00> : vector<8xf32>
    %99 = vector.multi_reduction <add>, %98, %cst_59 [1] : vector<8x32xf32> to vector<8xf32>
    %100 = vector.shape_cast %99 : vector<8xf32> to vector<8x1xf32>
    %cst_60 = arith.constant 3.200000e+01 : f32
    %101 = vector.broadcast %cst_60 : f32 to vector<8x1xf32>
    %102 = arith.divf %100, %101 : vector<8x1xf32>
    %103 = vector.broadcast %95 : vector<8x1xf32> to vector<8x32xf32>
    %104 = arith.subf %91, %103 : vector<8x32xf32>
    %cst_61 = arith.constant 9.99999974E-6 : f32
    %105 = vector.broadcast %cst_61 : f32 to vector<8x1xf32>
    %106 = arith.addf %102, %105 : vector<8x1xf32>
    %107 = math.rsqrt %106 : vector<8x1xf32>
    %108 = vector.broadcast %107 : vector<8x1xf32> to vector<8x32xf32>
    %109 = arith.mulf %104, %108 : vector<8x32xf32>
    %110 = vector.broadcast %84 : vector<1x32xf32> to vector<8x32xf32>
    %111 = arith.mulf %109, %110 : vector<8x32xf32>
    %112 = vector.broadcast %85 : vector<1x32xf32> to vector<8x32xf32>
    %113 = arith.addf %111, %112 : vector<8x32xf32>
    %114 = arith.negf %113 : vector<8x32xf32>
    %115 = math.exp %114 : vector<8x32xf32>
    %cst_62 = arith.constant 1.000000e+00 : f32
    %116 = vector.broadcast %cst_62 : f32 to vector<8x32xf32>
    %117 = arith.addf %116, %115 : vector<8x32xf32>
    %118 = arith.divf %116, %117 : vector<8x32xf32>
    %119 = arith.mulf %113, %118 : vector<8x32xf32>
    %cst_63 = arith.constant dense<0.000000e+00> : vector<8x32xf32>
    %120 = tpu.matmul %119, %86, %cst_63 {dimension_numbers = #tpu.dot_dimension_numbers<[1], [0], [0], [1], [0, 0, 1, 1], [], []>} : vector<8x32xf32>, vector<32x32xf32>, vector<8x32xf32> -> vector<8x32xf32>
    %121 = vector.broadcast %87 : vector<1x32xf32> to vector<8x32xf32>
    %122 = arith.addf %120, %121 : vector<8x32xf32>
    %123 = tpu.concatenate %40, %81, %122 in 0 : vector<8x32xf32>, vector<8x32xf32>, vector<8x32xf32> -> vector<24x32xf32>
    %124 = arith.mulf %123, %123 : vector<24x32xf32>
    %cst_64 = arith.constant dense<0.000000e+00> : vector<24xf32>
    %125 = vector.multi_reduction <add>, %124, %cst_64 [1] : vector<24x32xf32> to vector<24xf32>
    %126 = vector.shape_cast %125 : vector<24xf32> to vector<24x1xf32>
    %127 = math.sqrt %126 : vector<24x1xf32>
    %cst_65 = arith.constant 9.99999996E-13 : f32
    %128 = vector.broadcast %cst_65 : f32 to vector<24x1xf32>
    %129 = arith.maximumf %127, %128 : vector<24x1xf32>
    %130 = vector.broadcast %129 : vector<24x1xf32> to vector<24x32xf32>
    %131 = arith.divf %123, %130 : vector<24x32xf32>
    %c0_66 = arith.constant 0 : index
    %c0_67 = arith.constant 0 : index
    %132 = vector.load %arg21[%c0_66, %c0_67] : memref<32x32xf32, #tpu.memory_space<vmem>>, vector<32x32xf32>
    %cst_68 = arith.constant dense<0.000000e+00> : vector<24x32xf32>
    %133 = tpu.matmul %131, %132, %cst_68 {dimension_numbers = #tpu.dot_dimension_numbers<[1], [0], [0], [1], [0, 0, 1, 1], [], []>} : vector<24x32xf32>, vector<32x32xf32>, vector<24x32xf32> -> vector<24x32xf32>
    %c0_69 = arith.constant 0 : index
    %c0_70 = arith.constant 0 : index
    %134 = vector.load %arg22[%c0_69, %c0_70] : memref<1x32xf32, #tpu.memory_space<vmem>>, vector<1x32xf32>
    %135 = vector.broadcast %134 : vector<1x32xf32> to vector<24x32xf32>
    %136 = arith.addf %133, %135 : vector<24x32xf32>
    %137 = math.tanh %136 : vector<24x32xf32>
    %c0_71 = arith.constant 0 : index
    %c0_72 = arith.constant 0 : index
    %138 = vector.load %arg23[%c0_71, %c0_72] : memref<1x32xf32, #tpu.memory_space<vmem>>, vector<1x32xf32>
    %139 = vector.broadcast %138 : vector<1x32xf32> to vector<24x32xf32>
    %140 = arith.mulf %137, %139 : vector<24x32xf32>
    %cst_73 = arith.constant dense<0.000000e+00> : vector<24xf32>
    %141 = vector.multi_reduction <add>, %140, %cst_73 [1] : vector<24x32xf32> to vector<24xf32>
    %142 = vector.shape_cast %141 : vector<24xf32> to vector<24x1xf32>
    %143 = vector.extract_strided_slice %142 {offsets = [0, 0], sizes = [8, 1], strides = [1, 1]} : vector<24x1xf32> to vector<8x1xf32>
    %cst_74 = arith.constant dense<0.000000e+00> : vector<1xf32>
    %144 = vector.multi_reduction <add>, %143, %cst_74 [0] : vector<8x1xf32> to vector<1xf32>
    %145 = vector.shape_cast %144 : vector<1xf32> to vector<1x1xf32>
    %cst_75 = arith.constant 8.000000e+00 : f32
    %146 = vector.broadcast %cst_75 : f32 to vector<1x1xf32>
    %147 = arith.divf %145, %146 : vector<1x1xf32>
    %148 = vector.extract_strided_slice %142 {offsets = [8, 0], sizes = [8, 1], strides = [1, 1]} : vector<24x1xf32> to vector<8x1xf32>
    %cst_76 = arith.constant dense<0.000000e+00> : vector<1xf32>
    %149 = vector.multi_reduction <add>, %148, %cst_76 [0] : vector<8x1xf32> to vector<1xf32>
    %150 = vector.shape_cast %149 : vector<1xf32> to vector<1x1xf32>
    %cst_77 = arith.constant 8.000000e+00 : f32
    %151 = vector.broadcast %cst_77 : f32 to vector<1x1xf32>
    %152 = arith.divf %150, %151 : vector<1x1xf32>
    %153 = vector.extract_strided_slice %142 {offsets = [16, 0], sizes = [8, 1], strides = [1, 1]} : vector<24x1xf32> to vector<8x1xf32>
    %cst_78 = arith.constant dense<0.000000e+00> : vector<1xf32>
    %154 = vector.multi_reduction <add>, %153, %cst_78 [0] : vector<8x1xf32> to vector<1xf32>
    %155 = vector.shape_cast %154 : vector<1xf32> to vector<1x1xf32>
    %cst_79 = arith.constant 8.000000e+00 : f32
    %156 = vector.broadcast %cst_79 : f32 to vector<1x1xf32>
    %157 = arith.divf %155, %156 : vector<1x1xf32>
    %158 = arith.maximumf %147, %152 : vector<1x1xf32>
    %159 = arith.maximumf %158, %157 : vector<1x1xf32>
    %160 = arith.subf %147, %159 : vector<1x1xf32>
    %161 = math.exp %160 : vector<1x1xf32>
    %162 = arith.subf %152, %159 : vector<1x1xf32>
    %163 = math.exp %162 : vector<1x1xf32>
    %164 = arith.subf %157, %159 : vector<1x1xf32>
    %165 = math.exp %164 : vector<1x1xf32>
    %166 = arith.addf %161, %163 : vector<1x1xf32>
    %167 = arith.addf %166, %165 : vector<1x1xf32>
    %cst_80 = arith.constant 1.000000e+00 : f32
    %168 = vector.broadcast %cst_80 : f32 to vector<1x1xf32>
    %169 = arith.divf %168, %167 : vector<1x1xf32>
    %170 = arith.mulf %161, %169 : vector<1x1xf32>
    %171 = arith.mulf %163, %169 : vector<1x1xf32>
    %172 = arith.mulf %165, %169 : vector<1x1xf32>
    %173 = vector.broadcast %170 : vector<1x1xf32> to vector<8x32xf32>
    %174 = arith.mulf %173, %40 : vector<8x32xf32>
    %175 = vector.broadcast %171 : vector<1x1xf32> to vector<8x32xf32>
    %176 = arith.mulf %175, %81 : vector<8x32xf32>
    %177 = vector.broadcast %172 : vector<1x1xf32> to vector<8x32xf32>
    %178 = arith.mulf %177, %122 : vector<8x32xf32>
    %179 = tpu.concatenate %174, %176, %178 in 1 : vector<8x32xf32>, vector<8x32xf32>, vector<8x32xf32> -> vector<8x96xf32>
    %c0_81 = arith.constant 0 : index
    %c0_82 = arith.constant 0 : index
    %180 = vector.load %arg24[%c0_81, %c0_82] : memref<96x32xf32, #tpu.memory_space<vmem>>, vector<96x32xf32>
    %cst_83 = arith.constant dense<0.000000e+00> : vector<8x32xf32>
    %181 = tpu.matmul %179, %180, %cst_83 {dimension_numbers = #tpu.dot_dimension_numbers<[1], [0], [0], [1], [0, 0, 1, 1], [], []>} : vector<8x96xf32>, vector<96x32xf32>, vector<8x32xf32> -> vector<8x32xf32>
    %c0_84 = arith.constant 0 : index
    %c0_85 = arith.constant 0 : index
    %182 = vector.load %arg25[%c0_84, %c0_85] : memref<1x32xf32, #tpu.memory_space<vmem>>, vector<1x32xf32>
    %183 = vector.broadcast %182 : vector<1x32xf32> to vector<8x32xf32>
    %184 = arith.addf %181, %183 : vector<8x32xf32>
    %c0_86 = arith.constant 0 : index
    %c0_87 = arith.constant 0 : index
    %185 = vector.load %arg26[%c0_86, %c0_87] : memref<1x32xf32, #tpu.memory_space<vmem>>, vector<1x32xf32>
    %c0_88 = arith.constant 0 : index
    %c0_89 = arith.constant 0 : index
    %186 = vector.load %arg27[%c0_88, %c0_89] : memref<1x32xf32, #tpu.memory_space<vmem>>, vector<1x32xf32>
    %cst_90 = arith.constant dense<0.000000e+00> : vector<8xf32>
    %187 = vector.multi_reduction <add>, %184, %cst_90 [1] : vector<8x32xf32> to vector<8xf32>
    %188 = vector.shape_cast %187 : vector<8xf32> to vector<8x1xf32>
    %cst_91 = arith.constant 3.200000e+01 : f32
    %189 = vector.broadcast %cst_91 : f32 to vector<8x1xf32>
    %190 = arith.divf %188, %189 : vector<8x1xf32>
    %191 = vector.broadcast %190 : vector<8x1xf32> to vector<8x32xf32>
    %192 = arith.subf %184, %191 : vector<8x32xf32>
    %193 = arith.mulf %192, %192 : vector<8x32xf32>
    %cst_92 = arith.constant dense<0.000000e+00> : vector<8xf32>
    %194 = vector.multi_reduction <add>, %193, %cst_92 [1] : vector<8x32xf32> to vector<8xf32>
    %195 = vector.shape_cast %194 : vector<8xf32> to vector<8x1xf32>
    %cst_93 = arith.constant 3.200000e+01 : f32
    %196 = vector.broadcast %cst_93 : f32 to vector<8x1xf32>
    %197 = arith.divf %195, %196 : vector<8x1xf32>
    %198 = vector.broadcast %190 : vector<8x1xf32> to vector<8x32xf32>
    %199 = arith.subf %184, %198 : vector<8x32xf32>
    %cst_94 = arith.constant 9.99999974E-6 : f32
    %200 = vector.broadcast %cst_94 : f32 to vector<8x1xf32>
    %201 = arith.addf %197, %200 : vector<8x1xf32>
    %202 = math.rsqrt %201 : vector<8x1xf32>
    %203 = vector.broadcast %202 : vector<8x1xf32> to vector<8x32xf32>
    %204 = arith.mulf %199, %203 : vector<8x32xf32>
    %205 = vector.broadcast %185 : vector<1x32xf32> to vector<8x32xf32>
    %206 = arith.mulf %204, %205 : vector<8x32xf32>
    %207 = vector.broadcast %186 : vector<1x32xf32> to vector<8x32xf32>
    %208 = arith.addf %206, %207 : vector<8x32xf32>
    %209 = arith.negf %208 : vector<8x32xf32>
    %210 = math.exp %209 : vector<8x32xf32>
    %cst_95 = arith.constant 1.000000e+00 : f32
    %211 = vector.broadcast %cst_95 : f32 to vector<8x32xf32>
    %212 = arith.addf %211, %210 : vector<8x32xf32>
    %213 = arith.divf %211, %212 : vector<8x32xf32>
    %214 = arith.mulf %208, %213 : vector<8x32xf32>
    %c0_96 = arith.constant 0 : index
    %c0_97 = arith.constant 0 : index
    %215 = vector.load %arg28[%c0_96, %c0_97] : memref<32x32xf32, #tpu.memory_space<vmem>>, vector<32x32xf32>
    %cst_98 = arith.constant dense<0.000000e+00> : vector<8x32xf32>
    %216 = tpu.matmul %214, %215, %cst_98 {dimension_numbers = #tpu.dot_dimension_numbers<[1], [0], [0], [1], [0, 0, 1, 1], [], []>} : vector<8x32xf32>, vector<32x32xf32>, vector<8x32xf32> -> vector<8x32xf32>
    %c0_99 = arith.constant 0 : index
    %c0_100 = arith.constant 0 : index
    %217 = vector.load %arg29[%c0_99, %c0_100] : memref<1x32xf32, #tpu.memory_space<vmem>>, vector<1x32xf32>
    %218 = vector.broadcast %217 : vector<1x32xf32> to vector<8x32xf32>
    %219 = arith.addf %216, %218 : vector<8x32xf32>
    %c0_101 = arith.constant 0 : index
    %c0_102 = arith.constant 0 : index
    %220 = vector.load %arg30[%c0_101, %c0_102] : memref<8x32xf32, #tpu.memory_space<vmem>>, vector<8x32xf32>
    tpu.vector_store %arg30[%c0_101, %c0_102], %219 {strides = array<i32>} : memref<8x32xf32, #tpu.memory_space<vmem>>, vector<8x32xf32>,
    %221 = tpu.concatenate %170, %171, %172 in 1 : vector<1x1xf32>, vector<1x1xf32>, vector<1x1xf32> -> vector<1x3xf32>
    %c0_103 = arith.constant 0 : index
    %c0_104 = arith.constant 0 : index
    %222 = vector.load %arg31[%c0_103, %c0_104] : memref<1x3xf32, #tpu.memory_space<vmem>>, vector<1x3xf32>
    tpu.vector_store %arg31[%c0_103, %c0_104], %221 {strides = array<i32>} : memref<1x3xf32, #tpu.memory_space<vmem>>, vector<1x3xf32>,
    return
  }
}

</mosaic_0001>

<bundles_post_ra>
// kernel: tpu_custom_call.1
= control target key start
LH: loop header
LB: loop body
LE: loop exit
PB: predicated region body
PF: predicated region fallthrough
CT: control target
= control target key end

     0   :  { %s1690_s6 = smov 1   ;;  %s1691_s10 = smov 2   ;;  %s2063_s0 = inlined_call_operand.smem [shape: u32[32], index: -1, kind: input, shape index: {}] }
   0x1   :  { %s1736_s5 = sld [smem:[%s2063_s0]]   ;;  %s1692_s14 = smov 3  }
   0x2   :  { %s1741_s9 = sld [smem:[%s2063_s0 + %s1690_s6]]   ;;  %s1693_s18 = smov 4  }
   0x3   :  { %s1746_s13 = sld [smem:[%s2063_s0 + %s1691_s10]]   ;;  %s1694_s22 = smov 5  }
   0x4   :  { %s1751_s17 = sld [smem:[%s2063_s0 + %s1692_s14]]   ;;  %s1695_s26 = smov 6  }
   0x5   :  { %s1756_s21 = sld [smem:[%s2063_s0 + %s1693_s18]]   ;;  %s1696_s30 = smov 7  }
   0x6   :  { %s1761_s25 = sld [smem:[%s2063_s0 + %s1694_s22]]   ;;  %s1697_s4 = smov 8  }
   0x7   :  { %s1766_s29 = sld [smem:[%s2063_s0 + %s1695_s26]]   ;;  %s1698_s10 = smov 9  }
   0x8   :  { %s1771_s3 = sld [smem:[%s2063_s0 + %s1696_s30]]   ;;  %s1699_s15 = smov 10  }
   0x9   :  { %s1776_s8 = sld [smem:[%s2063_s0 + %s1697_s4]]   ;;  %s1700_s20 = smov 11  }
   0xa   :  { %s1781_s14 = sld [smem:[%s2063_s0 + %s1698_s10]]   ;;  %s1701_s26 = smov 12  }
   0xb   :  { %s1786_s19 = sld [smem:[%s2063_s0 + %s1699_s15]]   ;;  %s1702_s1 = smov 13  }
   0xc   :  { %s1791_s24 = sld [smem:[%s2063_s0 + %s1700_s20]]   ;;  %s1703_s7 = smov 14  }
   0xd   :  { %s1796_s30 = sld [smem:[%s2063_s0 + %s1701_s26]]   ;;  %s1704_s15 = smov 15  }
   0xe   :  { %s1801_s6 = sld [smem:[%s2063_s0 + %s1702_s1]]   ;;  %s1705_s22 = smov 16  }
   0xf   :  { %s1806_s12 = sld [smem:[%s2063_s0 + %s1703_s7]]   ;;  %s1706_s28 = smov 17  }
  0x10   :  { %s1811_s20 = sld [smem:[%s2063_s0 + %s1704_s15]]   ;;  %s1707_s7 = smov 18  }
  0x11   :  { %s1816_s27 = sld [smem:[%s2063_s0 + %s1705_s22]]   ;;  %s1708_s15 = smov 19  }
  0x12   :  { %2067 = sst [smem:[#allocation8_spill]] %s1791_s24  ;;  %s1709_s22 = smov 20  }
  0x13   :  { %2068 = sst [smem:[#allocation9_spill]] %s1796_s30 }
  0x14   :  { %2069 = sst [smem:[#allocation10_spill]] %s1801_s6 }
  0x15   :  { %2070 = sst [smem:[#allocation11_spill]] %s1806_s12 }
  0x16   :  { %s1821_s4 = sld [smem:[%s2063_s0 + %s1706_s28]]   ;;  %s1710_s28 = smov 21  }
  0x17   :  { %s1826_s12 = sld [smem:[%s2063_s0 + %s1707_s7]]   ;;  %s1711_s7 = smov 22  }
  0x18   :  { %s1831_s30 = sld [smem:[%s2063_s0 + %s1708_s15]]   ;;  %s1712_s15 = smov 23  }
  0x19   :  { %s1836_s24 = sld [smem:[%s2063_s0 + %s1709_s22]]   ;;  %s1713_s22 = smov 24  }
  0x1c   :  { %2071 = sst [smem:[#allocation12_spill]] %s1821_s4 }
  0x1d   :  { %2072 = sst [smem:[#allocation13_spill]] %s1826_s12 }
  0x1e   :  { %2073 = sst [smem:[#allocation14_spill]] %s1831_s30 }
  0x1f   :  { %2074 = sst [smem:[#allocation15_spill]] %s1836_s24 }
  0x20   :  { %s1841_s4 = sld [smem:[%s2063_s0 + %s1710_s28]]   ;;  %s1714_s28 = smov 25  }
  0x21   :  { %s1846_s12 = sld [smem:[%s2063_s0 + %s1711_s7]]   ;;  %s1715_s7 = smov 26  }
  0x22   :  { %s1851_s30 = sld [smem:[%s2063_s0 + %s1712_s15]]   ;;  %s1716_s15 = smov 27  }
  0x23   :  { %s1856_s24 = sld [smem:[%s2063_s0 + %s1713_s22]]   ;;  %s1717_s22 = smov 28  }
  0x24   :  { %s1861_s6 = sld [smem:[%s2063_s0 + %s1714_s28]]   ;;  %s1718_s28 = smov 29  }
  0x27   :  { %2075 = sst [smem:[#allocation16_spill]] %s1846_s12 }
  0x28   :  { %2076 = sst [smem:[#allocation17_spill]] %s1851_s30 }
  0x29   :  { %2077 = sst [smem:[#allocation18_spill]] %s1856_s24 }
  0x2a   :  { %2078 = sst [smem:[#allocation19_spill]] %s1861_s6 }
  0x2b   :  { %s1866_s12 = sld [smem:[%s2063_s0 + %s1715_s7]]   ;;  %s1719_s7 = smov 30  }
  0x2c   :  { %s1871_s30 = sld [smem:[%s2063_s0 + %s1716_s15]]   ;;  %s1720_s15 = smov 31  }
  0x2d   :  { %s1876_s24 = sld [smem:[%s2063_s0 + %s1717_s22]]  }
  0x2e   :  { %s1881_s6 = sld [smem:[%s2063_s0 + %s1718_s28]]  }
  0x31   :  { %2079 = sst [smem:[#allocation20_spill]] %s1866_s12 }
  0x32   :  { %2080 = sst [smem:[#allocation21_spill]] %s1871_s30 }
  0x33   :  { %s1886_s12 = sld [smem:[%s2063_s0 + %s1719_s7]]  }
  0x34   :  { %s1891_s30 = sld [smem:[%s2063_s0 + %s1720_s15]]  }
  0x35   :  { %69 = vsyncpa [#allocation3], 0  ;;  %v131_v0 = vld [vmem:[%s1751_s17] sm:$0xff]  ;;  %v132_v1 = vld [vmem:[%s1751_s17 + $0x8] sm:$0xff]  ;;  %v1721_v3 = vmov 0.0|0.0   ;;  %vm1722_vm0 = vmmov 0  }
  0x36   :  { %v133_v2 = vld [vmem:[%s1751_s17 + $0x10] sm:$0xff]  ;;  %1479 = vmatprep.subr.bf16.mxu0 %v1721_v3  ;;  %v1480_v4 = vpack.c.bf16 %v132_v1, %v131_v0  ;;  %v134_v5 = vld [vmem:[%s1751_s17 + $0x18] sm:$0xff]  ;;  %v1723_v6 = vmov 0.0   ;;  %1491 = vmatprep.subr.bf16.mxu1 %v1721_v3 }
  0x37   :  { %1362 = vmatprep.mubr.msk.f32.mxu0 %vm1722_vm0, %v1723_v6  ;;  %1373 = vmatprep.mubr.msk.f32.mxu1 %vm1722_vm0, %v1723_v6  ;;  %v1483_v7 = vpack.c.bf16 %v134_v5, %v133_v2 }
  0x38   :  { %1481 = vmatpush3.bf16.msra.mxu0 %v1480_v4 }
  0x39   :  { %70 = vsyncpa [#allocation5], 0  ;;  %1482 = vmatprep.subr.bf16.mxu0 %v1721_v3  ;;  %v135_v8 = vld [vmem:[%s1751_s17 + $0x20] sm:$0xff]  ;;  %v136_v9 = vld [vmem:[%s1751_s17 + $0x28] sm:$0xff]  ;;  %vm154_vm1 = vcmask 523264   ;;  %vm228_vm2 = vcmask 261120  }
  0x3a   :  { %v1486_v10 = vpack.c.bf16 %v136_v9, %v135_v8  ;;  %v137_v11 = vld [vmem:[%s1751_s17 + $0x30] sm:$0xff]  ;;  %v138_v12 = vld [vmem:[%s1751_s17 + $0x38] sm:$0xff]  ;;  %v147_v14 = vld [vmem:[%s1736_s5] sm:$0xff]  ;;  %vm569_vm3 = vcmask 392192   ;;  %s2081_s0 = sld [smem:[#allocation10_spill]]  ;;  %s2082_s5 = sld [smem:[#allocation8_spill]] }
  0x3b   :  { %v1489_v13 = vpack.c.bf16 %v138_v12, %v137_v11  ;;  %v1252_v15 = vld [vmem:[%s1756_s21] ss:$0 sm:$0xff]  ;;  %v143_v26 = vld [vmem:[%s1771_s3 + $0x8] sm:$0xff]  ;;  %v144_v27 = vld [vmem:[%s1771_s3 + $0x10] sm:$0xff]  ;;  %s2085_s17 = sld [smem:[#allocation13_spill]]  ;;  %s2086_s21 = sld [smem:[#allocation14_spill]] }
  0x3c   :  { %1484 = vmatpush3.bf16.msra.mxu0 %v1483_v7  ;;  %v142_v25 = vld [vmem:[%s1771_s3] sm:$0xff]  ;;  %v145_v29 = vld [vmem:[%s1771_s3 + $0x18] sm:$0xff]  ;;  %v344_v44 = vld [vmem:[%s1781_s14 + $0x8] sm:$0xff]  ;;  %s2089_s3 = sld [smem:[#allocation17_spill]]  ;;  %vm1187_vm10 = vcmask 7168   ;;  %vm1189_vm11 = vcmask 15360  }
  0x3d   :  { %1485 = vmatprep.subr.bf16.mxu0 %v1721_v3  ;;  %v1492_v28 = vpack.c.bf16 %v143_v26, %v142_v25  ;;  %v1495_v30 = vpack.c.bf16 %v145_v29, %v144_v27  ;;  %v1254_v35 = vld [vmem:[%s1761_s25] ss:$0 sm:$0xff]  ;;  %v345_v48 = vld [vmem:[%s1781_s14 + $0x10] sm:$0xff]  ;;  %v346_v49 = vld [vmem:[%s1781_s14 + $0x18] sm:$0xff]  ;;  %s2087_s25 = sld [smem:[#allocation16_spill]]  ;;  %vm1191_vm12 = vcmask 16384  }
  0x3e   :  { %v1255_v37 = vld [vmem:[%s1766_s29] ss:$0 sm:$0xff]  ;;  %v1501_v50 = vpack.c.bf16 %v346_v49, %v345_v48  ;;  %v549_v52 = vld [vmem:[%s1811_s20 + $0x8] sm:$0xff]  ;;  %v550_v55 = vld [vmem:[%s1811_s20 + $0x10] sm:$0xff]  ;;  %s2088_s29 = sld [smem:[#allocation11_spill]]  ;;  %vm992_vm13 = vcmask 785408  }
  0x3f   :  { %1493 = vmatpush3.bf16.msra.mxu1 %v1492_v28  ;;  %v343_v43 = vld [vmem:[%s1781_s14] sm:$0xff]  ;;  %v551_v56 = vld [vmem:[%s1811_s20 + $0x18] sm:$0xff]  ;;  %v553_v59 = vld [vmem:[%s1811_s20 + $0x28] sm:$0xff]  ;;  %s2091_s14 = sld [smem:[#allocation18_spill]]  ;;  %s2094_s22 = sld [smem:[#allocation21_spill]] }
  0x40   :  { %1487 = vmatpush3.bf16.msra.mxu0 %v1486_v10  ;;  %1494 = vmatprep.subr.bf16.mxu1 %v1721_v3  ;;  %v1498_v46 = vpack.c.bf16 %v344_v44, %v343_v43  ;;  %v548_v51 = vld [vmem:[%s1811_s20] sm:$0xff]  ;;  %v1513_v57 = vpack.c.bf16 %v551_v56, %v550_v55  ;;  %v799_v27 = vld [vmem:[%s1841_s4 + $0x8] sm:$0xff]  ;;  %v800_v29 = vld [vmem:[%s1841_s4 + $0x10] sm:$0xff] }
  0x41   :  { %1488 = vmatprep.subr.bf16.mxu0 %v1721_v3  ;;  %v355_v53 = vld [vmem:[%s1741_s9] sm:$0xff]  ;;  %v1510_v54 = vpack.c.bf16 %v549_v52, %v548_v51  ;;  %s2083_s9 = sld [smem:[#allocation9_spill]] }
  0x42   :  { %v552_v58 = vld [vmem:[%s1811_s20 + $0x20] sm:$0xff]  ;;  %s1724_s20 = smov 64  }
  0x43   :  { %1496 = vmatpush3.bf16.msra.mxu1 %v1495_v30  ;;  %v1516_v60 = vpack.c.bf16 %v553_v59, %v552_v58  ;;  %v562_v61 = vld [vmem:[%s1746_s13] sm:$0xff]  ;;  %v801_v30 = vld [vmem:[%s1841_s4 + $0x18] sm:$0xff]  ;;  %s2084_s13 = sld [smem:[#allocation12_spill]] }
  0x44   :  { %1490 = vmatpush3.bf16.msra.mxu0 %v1489_v13  ;;  %1497 = vmatprep.subr.bf16.mxu1 %v1721_v3  ;;  %v1259_v0 = vld [vmem:[%s1786_s19] ss:$0 sm:$0xff]  ;;  %s2092_s19 = sld [smem:[#allocation19_spill]] }
  0x45   :  { %1503 = vmatprep.subr.bf16.mxu0 %v1721_v3  ;;  %v1266_v7 = vld [vmem:[%s1816_s27] ss:$0 sm:$0xff]  ;;  %s1725_s27 = smov 32  }
  0x46   :  { %v1257_v12 = vld [vmem:[%s1776_s8] ss:$0 sm:$0xff]  ;;  %s2090_s8 = sld [smem:[#allocation15_spill]] }
  0x47   :  { %1363 = vmatmul.mubr.msk.f32.vlgmr.msra.gmra.mrb[0].mxu0 %vm154_vm1, %v147_v14  ;;  %v798_v26 = vld [vmem:[%s1841_s4] sm:$0xff]  ;;  %s2093_s4 = sld [smem:[#allocation20_spill]] }
  0x48   :  { %1395 = vmatprep.mubr.msk.f32.mxu0 %vm1722_vm0, %v1723_v6  ;;  %v1525_v28 = vpack.c.bf16 %v799_v27, %v798_v26 }
  0x49   :  { %v1268_v59 = vld [vmem:[%s2084_s13] ss:$0 sm:$0xff] }
 0x11a   :  { %v224_v16 = vpop.f32.mrb[0].mxu0 }
 0x11b   :  { %v225_v17 = vadd.f32 %v1252_v15, %v224_v16  ;;  %v1364_v18 = vpop.f32.mrb[1].mxu0 }
 0x11d   :  { %v229_v19 = vsel %vm228_vm2, %v225_v17, 0.0 }
 0x11e   :  { %230 = vadd.xlane.f32.xlu0 %v229_v19 }
 0x1ab   :  { %v231_v20 = vpop.xlane.xlu0 %230 }
 0x1ac   :  { %v233_v21 = vmul.f32 0.03125, %v231_v20 }
 0x1ae   :  { %v234_v22 = vsub.f32 %v225_v17, %v233_v21 }
 0x1b0   :  { %v235_v23 = vmul.f32 %v234_v22, %v234_v22 }
 0x1b2   :  { %v236_v24 = vsel %vm228_vm2, %v235_v23, 0.0 }
 0x1b3   :  { %237 = vadd.xlane.f32.xlu0 %v236_v24 }
 0x240   :  { %v238_v31 = vpop.xlane.xlu0 %237 }
 0x241   :  { %v239_v32 = vmul.f32 0.03125, %v238_v31  ;;  %v1528_v31 = vpack.c.bf16 %v801_v30, %v800_v29  ;;  %v1277_v29 = vld [vmem:[%s2089_s3] ss:$0 sm:$0xff] }
 0x243   :  { %v240_v33 = vadd.f32 1e-05, %v239_v32  ;;  %v350_v32 = vld [vmem:[%s2081_s0] sm:$0xff] }
 0x245   :  { %1592 = vrsqrt.f32 %v240_v33  ;;  %v351_v33 = vld [vmem:[%s2081_s0 + $0x8] sm:$0xff] }
 0x24f   :  { %v1593_v34 = vpop.eup %1592 }
 0x250   :  { %v242_v36 = vmul.f32 %v1593_v34, %v234_v22  ;;  %v352_v34 = vld [vmem:[%s2081_s0 + $0x10] sm:$0xff] }
 0x252   :  { %v249_v38 = vmul.f32 %v1254_v35, %v242_v36  ;;  %v1504_v35 = vpack.c.bf16 %v351_v33, %v350_v32  ;;  %v353_v36 = vld [vmem:[%s2081_s0 + $0x18] sm:$0xff] }
 0x254   :  { %v256_v39 = vadd.f32 %v1255_v37, %v249_v38  ;;  %1505 = vmatpush3.bf16.msra.mxu0 %v1504_v35  ;;  %v1507_v37 = vpack.c.bf16 %v353_v36, %v352_v34  ;;  %v1271_v34 = vld [vmem:[%s2090_s8] ss:$0 sm:$0xff] }
 0x255   :  { %1506 = vmatprep.subr.bf16.mxu0 %v1721_v3 }
 0x256   :  { %v1256_v40 = vmul.f32 -1.442695, %v256_v39 }
 0x258   :  { %1594 = vpow2.f32 %v1256_v40  ;;  %1508 = vmatpush3.bf16.msra.mxu0 %v1507_v37 }
 0x259   :  { %1518 = vmatprep.subr.bf16.mxu0 %v1721_v3 }
 0x262   :  { %v1595_v41 = vpop.eup %1594 }
 0x263   :  { %v260_v42 = vadd.f32 1.0, %v1595_v41 }
 0x265   :  { %1596 = vrcp.f32 %v260_v42 }
 0x26f   :  { %v1597_v45 = vpop.eup %1596 }
 0x270   :  { %v263_v47 = vmul.f32 %v1597_v45, %v256_v39  ;;  %v1261_v45 = vld [vmem:[%s2082_s5] ss:$0 sm:$0xff] }
 0x272   :  { %1374 = vmatmul.mubr.msk.f32.vlgmr.msra.gmra.mrb[0].mxu1 %vm228_vm2, %v263_v47 }
 0x273   :  { %1499 = vmatpush3.bf16.msra.mxu1 %v1498_v46  ;;  %1384 = vmatprep.mubr.msk.f32.mxu1 %vm1722_vm0, %v1723_v6 }
 0x274   :  { %1500 = vmatprep.subr.bf16.mxu1 %v1721_v3 }
 0x277   :  { %1502 = vmatpush3.bf16.msra.mxu1 %v1501_v50  ;;  %v1262_v50 = vld [vmem:[%s2083_s9] ss:$0 sm:$0xff] }
 0x278   :  { %1509 = vmatprep.subr.bf16.mxu1 %v1721_v3 }
 0x27a   :  { %1385 = vmatmul.mubr.msk.f32.vlgmr.msra.gmra.mrb[2].mxu1 %vm228_vm2, %v355_v53 }
 0x27b   :  { %1511 = vmatpush3.bf16.msra.mxu1 %v1510_v54  ;;  %1410 = vmatprep.mubr.msk.f32.mxu1 %vm1722_vm0, %v1723_v6 }
 0x27c   :  { %1512 = vmatprep.subr.bf16.mxu1 %v1721_v3 }
 0x27f   :  { %1514 = vmatpush3.bf16.msra.mxu1 %v1513_v57 }
 0x280   :  { %1515 = vmatprep.subr.bf16.mxu1 %v1721_v3 }
 0x283   :  { %1517 = vmatpush3.bf16.msra.mxu1 %v1516_v60 }
 0x284   :  { %1524 = vmatprep.subr.bf16.mxu1 %v1721_v3 }
 0x286   :  { %1411 = vmatmul.mubr.msk.f32.vlgmr.msra.gmra.mrb[4].mxu1 %vm569_vm3, %v562_v61  ;;  %v1269_v61 = vld [vmem:[%s2085_s17] ss:$0 sm:$0xff] }
 0x287   :  { %1432 = vmatprep.mubr.msk.f32.mxu1 %vm1722_vm0, %v1723_v6  ;;  %1526 = vmatpush3.bf16.msra.mxu1 %v1525_v28 }
 0x288   :  { %1527 = vmatprep.subr.bf16.mxu1 %v1721_v3 }
 0x28b   :  { %1529 = vmatpush3.bf16.msra.mxu1 %v1528_v31 }
 0x28c   :  { %1548 = vmatprep.subr.bf16.mxu1 %v1721_v3 }
 0x345   :  { %v339_v62 = vpop.f32.mrb[0].mxu1 }
 0x346   :  { %v1375_v63 = vpop.f32.mrb[1].mxu1  ;;  %v1956_v15 = vadd.f32 %v1257_v12, %v339_v62 }
 0x348   :  { %v756_v19 = vmul.f32 %v1956_v15, %v1956_v15 }
 0x34a   :  { %v759_v20 = vsel %vm228_vm2, %v756_v19, 0.0 }
 0x34d   :  { %v431_v1 = vpop.f32.mrb[2].mxu1 }
 0x34e   :  { %v432_v2 = vadd.f32 %v1259_v0, %v431_v1  ;;  %v1386_v4 = vpop.f32.mrb[3].mxu1 }
 0x350   :  { %v435_v5 = vsel %vm228_vm2, %v432_v2, 0.0 }
 0x351   :  { %436 = vadd.xlane.f32.xlu1 %v435_v5 }
 0x359   :  { %v639_v8 = vpop.f32.mrb[4].mxu1 }
 0x35a   :  { %v640_v9 = vadd.f32 %v1266_v7, %v639_v8  ;;  %v1412_v10 = vpop.f32.mrb[5].mxu1  ;;  %v557_v7 = vld [vmem:[%s2086_s21] sm:$0xff]  ;;  %v558_v8 = vld [vmem:[%s2086_s21 + $0x8] sm:$0xff] }
 0x35c   :  { %v643_v11 = vsel %vm228_vm2, %v640_v9, 0.0 }
 0x35d   :  { %644 = vadd.xlane.f32.xlu1 %v643_v11  ;;  %v1519_v11 = vpack.c.bf16 %v558_v8, %v557_v7  ;;  %v973_v7 = vld [vmem:[%s2091_s14] sm:$0xff]  ;;  %v974_v8 = vld [vmem:[%s2091_s14 + $0x8] sm:$0xff] }
 0x3de   :  { %v437_v13 = vpop.xlane.xlu1 %436 }
 0x3df   :  { %v438_v14 = vmul.f32 0.03125, %v437_v13 }
 0x3e1   :  { %v439_v16 = vsub.f32 %v432_v2, %v438_v14  ;;  %v559_v14 = vld [vmem:[%s2086_s21 + $0x10] sm:$0xff] }
 0x3e3   :  { %v440_v17 = vmul.f32 %v439_v16, %v439_v16 }
 0x3e5   :  { %v441_v18 = vsel %vm228_vm2, %v440_v17, 0.0 }
 0x3e6   :  { %442 = vadd.xlane.f32.xlu0 %v441_v18 }
 0x3ea   :  { %760 = vadd.xlane.f32.xlu0 %v759_v20  ;;  %v645_v21 = vpop.xlane.xlu1 %644  ;;  %v1273_v20 = vld [vmem:[%s2087_s25] ss:$0 sm:$0xff] }
 0x3eb   :  { %v646_v22 = vmul.f32 0.03125, %v645_v21 }
 0x3ed   :  { %v647_v23 = vsub.f32 %v640_v9, %v646_v22 }
 0x3ef   :  { %v648_v24 = vmul.f32 %v647_v23, %v647_v23 }
 0x3f1   :  { %v649_v25 = vsel %vm228_vm2, %v648_v24, 0.0  ;;  %v1264_v24 = vld [vmem:[%s2088_s29] ss:$0 sm:$0xff] }
 0x3f2   :  { %650 = vadd.xlane.f32.xlu1 %v649_v25 }
 0x473   :  { %v443_v38 = vpop.xlane.xlu0 %442 }
 0x474   :  { %v444_v39 = vmul.f32 0.03125, %v443_v38 }
 0x476   :  { %v445_v40 = vadd.f32 1e-05, %v444_v39 }
 0x477   :  { %v761_v41 = vpop.xlane.xlu0 %760 }
 0x478   :  { %1598 = vrsqrt.f32 %v445_v40  ;;  %vm770_vm4 = vcmp.eq.f32.partialorder %v761_v41, inf  ;;  %v773_v52 = vand.u32 2147483648, %v761_v41  ;;  %vm772_vm5 = vcmp.eq.f32.partialorder %v761_v41, 0.0 }
 0x479   :  { %1600 = vrsqrt.f32 %v761_v41 }
 0x47f   :  { %v651_v42 = vpop.xlane.xlu1 %650 }
 0x480   :  { %v652_v43 = vmul.f32 0.03125, %v651_v42 }
 0x482   :  { %v1599_v44 = vpop.eup %1598  ;;  %v653_v46 = vadd.f32 1e-05, %v652_v43 }
 0x483   :  { %v1601_v47 = vpop.eup %1600  ;;  %v447_v48 = vmul.f32 %v1599_v44, %v439_v16  ;;  %v560_v16 = vld [vmem:[%s2086_s21 + $0x18] sm:$0xff] }
 0x484   :  { %v769_v49 = vmul.f32 %v1601_v47, %v761_v41  ;;  %1602 = vrsqrt.f32 %v653_v46  ;;  %v1522_v17 = vpack.c.bf16 %v560_v16, %v559_v14  ;;  %v978_v14 = vld [vmem:[%s2091_s14 + $0x28] sm:$0xff] }
 0x485   :  { %v454_v51 = vmul.f32 %v1261_v45, %v447_v48 }
 0x486   :  { %v771_v53 = vsel %vm770_vm4, %v761_v41, %v769_v49 }
 0x487   :  { %v774_v54 = vsel %vm772_vm5, %v773_v52, %v771_v53  ;;  %v461_v55 = vadd.f32 %v1262_v50, %v454_v51 }
 0x488   :  { %v789_v56 = vmax.f32 %v774_v54, 1e-12 }
 0x489   :  { %v1263_v57 = vmul.f32 -1.442695, %v461_v55 }
 0x48a   :  { %1604 = vrcp.f32 %v789_v56 }
 0x48b   :  { %1606 = vpow2.f32 %v1263_v57 }
 0x48e   :  { %v1603_v58 = vpop.eup %1602 }
 0x48f   :  { %v655_v60 = vmul.f32 %v1603_v58, %v647_v23 }
 0x491   :  { %v662_v62 = vmul.f32 %v1268_v59, %v655_v60 }
 0x493   :  { %v669_v63 = vadd.f32 %v1269_v61, %v662_v62 }
 0x494   :  { %v1605_v0 = vpop.eup %1604 }
 0x495   :  { %v1607_v1 = vpop.eup %1606  ;;  %v793_v2 = vmul.f32 %v1605_v0, %v1956_v15  ;;  %v1270_v4 = vmul.f32 -1.442695, %v669_v63 }
 0x496   :  { %v465_v5 = vadd.f32 1.0, %v1607_v1 }
 0x497   :  { %1433 = vmatmul.mubr.msk.f32.vlgmr.msra.gmra.mrb[6].mxu1 %vm228_vm2, %v793_v2  ;;  %1608 = vpow2.f32 %v1270_v4 }
 0x498   :  { %1610 = vrcp.f32 %v465_v5  ;;  %1435 = vmatprep.mubr.msk.f32.mxu1 %vm1722_vm0, %v1723_v6 }
 0x4a1   :  { %v1609_v9 = vpop.eup %1608 }
 0x4a2   :  { %v1611_v10 = vpop.eup %1610  ;;  %v673_v12 = vadd.f32 1.0, %v1609_v9  ;;  %v975_v9 = vld [vmem:[%s2091_s14 + $0x10] sm:$0xff] }
 0x4a3   :  { %v468_v13 = vmul.f32 %v1611_v10, %v461_v55  ;;  %v1531_v10 = vpack.c.bf16 %v974_v8, %v973_v7 }
 0x4a4   :  { %1612 = vrcp.f32 %v673_v12 }
 0x4a5   :  { %1396 = vmatmul.mubr.msk.f32.vlgmr.msra.gmra.mrb[2].mxu0 %vm228_vm2, %v468_v13  ;;  %v977_v13 = vld [vmem:[%s2091_s14 + $0x20] sm:$0xff] }
 0x4a6   :  { %1520 = vmatpush3.bf16.msra.mxu0 %v1519_v11  ;;  %1421 = vmatprep.mubr.msk.f32.mxu0 %vm1722_vm0, %v1723_v6  ;;  %v976_v11 = vld [vmem:[%s2091_s14 + $0x18] sm:$0xff]  ;;  %v1537_v16 = vpack.c.bf16 %v978_v14, %v977_v13 }
 0x4a7   :  { %1521 = vmatprep.subr.bf16.mxu0 %v1721_v3  ;;  %v1534_v12 = vpack.c.bf16 %v976_v11, %v975_v9 }
 0x4aa   :  { %1523 = vmatpush3.bf16.msra.mxu0 %v1522_v17  ;;  %v979_v17 = vld [vmem:[%s2091_s14 + $0x30] sm:$0xff] }
 0x4ab   :  { %1530 = vmatprep.subr.bf16.mxu0 %v1721_v3 }
 0x4ae   :  { %v1613_v18 = vpop.eup %1612 }
 0x4af   :  { %v676_v19 = vmul.f32 %v1613_v18, %v669_v63  ;;  %v980_v18 = vld [vmem:[%s2091_s14 + $0x38] sm:$0xff] }
 0x4b1   :  { %1422 = vmatmul.mubr.msk.f32.vlgmr.msra.gmra.mrb[4].mxu0 %vm228_vm2, %v676_v19  ;;  %v1540_v19 = vpack.c.bf16 %v980_v18, %v979_v17 }
 0x4b2   :  { %1465 = vmatprep.mubr.msk.f32.mxu0 %vm1722_vm0, %v1723_v6  ;;  %1532 = vmatpush3.bf16.msra.mxu0 %v1531_v10 }
 0x4b3   :  { %1533 = vmatprep.subr.bf16.mxu0 %v1721_v3 }
 0x4b6   :  { %1535 = vmatpush3.bf16.msra.mxu0 %v1534_v12 }
 0x4b7   :  { %1536 = vmatprep.subr.bf16.mxu0 %v1721_v3 }
 0x4ba   :  { %1538 = vmatpush3.bf16.msra.mxu0 %v1537_v16 }
 0x4bb   :  { %1539 = vmatprep.subr.bf16.mxu0 %v1721_v3 }
 0x4be   :  { %1541 = vmatpush3.bf16.msra.mxu0 %v1540_v19 }
 0x4bf   :  { %1542 = vmatprep.subr.bf16.mxu0 %v1721_v3 }
 0x56a   :  { %v884_v21 = vpop.f32.mrb[6].mxu1 }
 0x56b   :  { %v1434_v22 = vpop.f32.mrb[7].mxu1  ;;  %v885_v23 = vadd.f32 %v1273_v20, %v884_v21  ;;  %v982_v21 = vld [vmem:[%s2091_s14 + $0x48] sm:$0xff] }
 0x56d   :  { %1614 = vtanh.f32 %v885_v23  ;;  %v983_v23 = vld [vmem:[%s2091_s14 + $0x50] sm:$0xff] }
 0x577   :  { %v1615_v28 = vpop.eup %1614 }
 0x578   :  { %v544_v25 = vpop.f32.mrb[2].mxu0  ;;  %v908_v32 = vmul.f32 %v1615_v28, %v1277_v29 }
 0x579   :  { %v1997_v26 = vadd.f32 %v1264_v24, %v544_v25  ;;  %v1397_v27 = vpop.f32.mrb[3].mxu0  ;;  %v984_v24 = vld [vmem:[%s2091_s14 + $0x58] sm:$0xff] }
 0x57a   :  { %v911_v33 = vsel %vm228_vm2, %v908_v32, 0.0  ;;  %v1546_v25 = vpack.c.bf16 %v984_v24, %v983_v23  ;;  %v1102_v23 = vld [vmem:[%s1876_s24] sm:$0xff]  ;;  %v1103_v24 = vld [vmem:[%s1876_s24 + $0x8] sm:$0xff] }
 0x57b   :  { %v757_v30 = vmul.f32 %v1997_v26, %v1997_v26 }
 0x57d   :  { %v762_v31 = vsel %vm228_vm2, %v757_v30, 0.0 }
 0x57e   :  { %763 = vadd.xlane.f32.xlu1 %v762_v31 }
 0x582   :  { %912 = vadd.xlane.f32.xlu1 %v911_v33 }
 0x584   :  { %v752_v35 = vpop.f32.mrb[4].mxu0 }
 0x585   :  { %v2005_v36 = vadd.f32 %v1271_v34, %v752_v35  ;;  %v1423_v37 = vpop.f32.mrb[5].mxu0 }
 0x587   :  { %v758_v38 = vmul.f32 %v2005_v36, %v2005_v36 }
 0x589   :  { %v765_v39 = vsel %vm228_vm2, %v758_v38, 0.0 }
 0x58a   :  { %766 = vadd.xlane.f32.xlu0 %v765_v39 }
 0x60b   :  { %v764_v40 = vpop.xlane.xlu1 %763 }
 0x60c   :  { %1616 = vrsqrt.f32 %v764_v40  ;;  %vm777_vm6 = vcmp.eq.f32.partialorder %v764_v40, inf  ;;  %v780_v44 = vand.u32 2147483648, %v764_v40  ;;  %vm779_vm7 = vcmp.eq.f32.partialorder %v764_v40, 0.0 }
 0x60f   :  { %v913_v27 = vpop.xlane.xlu1 %912 }
 0x610   :  { %v920_v28 = vrot.slane %v913_v27, 4 }
 0x612   :  { %v921_v31 = vadd.f32 %v920_v28, %v913_v27  ;;  %v1549_v27 = vpack.c.bf16 %v1103_v24, %v1102_v23  ;;  %v1105_v28 = vld [vmem:[%s1876_s24 + $0x18] sm:$0xff] }
 0x614   :  { %v922_v34 = vrot.slane %v921_v31, 2  ;;  %1550 = vmatpush3.bf16.msra.mxu1 %v1549_v27 }
 0x615   :  { %1551 = vmatprep.subr.bf16.mxu1 %v1721_v3 }
 0x616   :  { %v1617_v41 = vpop.eup %1616  ;;  %v923_v37 = vadd.f32 %v922_v34, %v921_v31  ;;  %v1280_v34 = vld [vmem:[%s2093_s4] ss:$0 sm:$0xff] }
 0x617   :  { %v776_v42 = vmul.f32 %v1617_v41, %v764_v40  ;;  %v767_v43 = vpop.xlane.xlu0 %766 }
 0x618   :  { %1618 = vrsqrt.f32 %v767_v43  ;;  %vm784_vm8 = vcmp.eq.f32.partialorder %v767_v43, inf  ;;  %v787_v50 = vand.u32 2147483648, %v767_v43  ;;  %vm786_vm9 = vcmp.eq.f32.partialorder %v767_v43, 0.0 }
 0x619   :  { %v778_v45 = vsel %vm777_vm6, %v764_v40, %v776_v42  ;;  %v924_v41 = vrot.slane %v923_v37, 1 }
 0x61a   :  { %v781_v46 = vsel %vm779_vm7, %v780_v44, %v778_v45 }
 0x61b   :  { %v790_v47 = vmax.f32 %v781_v46, 1e-12  ;;  %v925_v45 = vadd.f32 %v924_v41, %v923_v37  ;;  %v1281_v37 = vld [vmem:[%s2094_s22] ss:$0 sm:$0xff] }
 0x61d   :  { %1620 = vrcp.f32 %v790_v47 }
 0x622   :  { %v1619_v48 = vpop.eup %1618 }
 0x623   :  { %v783_v49 = vmul.f32 %v1619_v48, %v767_v43 }
 0x625   :  { %v785_v51 = vsel %vm784_vm8, %v767_v43, %v783_v49  ;;  %v927_v49 = vmul.f32 0.125, %v925_v45 }
 0x626   :  { %v788_v52 = vsel %vm786_vm9, %v787_v50, %v785_v51 }
 0x627   :  { %v1621_v53 = vpop.eup %1620  ;;  %v791_v54 = vmax.f32 %v788_v52, 1e-12 }
 0x628   :  { %v795_v55 = vmul.f32 %v1621_v53, %v1997_v26 }
 0x629   :  { %1622 = vrcp.f32 %v791_v54 }
 0x62a   :  { %1436 = vmatmul.mubr.msk.f32.gmra.mrb[8].mxu1 %vm228_vm2, %v795_v55 }
 0x62b   :  { %1438 = vmatprep.mubr.msk.f32.mxu1 %vm1722_vm0, %v1723_v6 }
 0x633   :  { %v1623_v56 = vpop.eup %1622 }
 0x634   :  { %v797_v57 = vmul.f32 %v1623_v56, %v2005_v36 }
 0x636   :  { %1439 = vmatmul.mubr.msk.f32.gmra.mrb[10].mxu1 %vm228_vm2, %v797_v57 }
 0x637   :  { %1476 = vmatprep.mubr.msk.f32.mxu1 %vm1722_vm0, %v1723_v6 }
 0x6fd   :  { %v889_v58 = vpop.f32.mrb[8].mxu1 }
 0x6fe   :  { %v890_v59 = vadd.f32 %v1273_v20, %v889_v58  ;;  %v1437_v60 = vpop.f32.mrb[9].mxu1 }
 0x700   :  { %1624 = vtanh.f32 %v890_v59 }
 0x709   :  { %v894_v61 = vpop.f32.mrb[10].mxu1 }
 0x70a   :  { %v1625_v62 = vpop.eup %1624  ;;  %v895_v63 = vadd.f32 %v1273_v20, %v894_v61  ;;  %v1440_v0 = vpop.f32.mrb[11].mxu1  ;;  %v981_v20 = vld [vmem:[%s2091_s14 + $0x40] sm:$0xff] }
 0x70b   :  { %v909_v1 = vmul.f32 %v1625_v62, %v1277_v29  ;;  %v1543_v22 = vpack.c.bf16 %v982_v21, %v981_v20 }
 0x70c   :  { %1626 = vtanh.f32 %v895_v63 }
 0x70d   :  { %v914_v2 = vsel %vm228_vm2, %v909_v1, 0.0  ;;  %1544 = vmatpush3.bf16.msra.mxu0 %v1543_v22 }
 0x70e   :  { %915 = vadd.xlane.f32.xlu0 %v914_v2  ;;  %1545 = vmatprep.subr.bf16.mxu0 %v1721_v3 }
 0x711   :  { %1547 = vmatpush3.bf16.msra.mxu0 %v1546_v25  ;;  %v1104_v25 = vld [vmem:[%s1876_s24 + $0x10] sm:$0xff]  ;;  %s1726_s24 = smov [#allocation4]  }
 0x712   :  { %s1209_s23 = sshll.u32 %s1726_s24, 4  ;;  %s1210_s23 = int_to_ptr.vmem [resolvable:$true] %s1209_s23 }
 0x713   :  { %s1642_s26 = scalar_lea.vmem %s1210_s23, 16  ;;  %s1646_s28 = scalar_lea.vmem %s1210_s23, 32 }
 0x714   :  { %p1643_p0 = scmp.ne.s32.totalorder %s1210_s23, %s1642_s26  ;;  %p1647_p1 = scmp.lt.s32.totalorder %s1210_s23, %s1210_s23 }
 0x715   :  { %p1648_p2 = scmp.lt.s32.totalorder %s1646_s28, %s1642_s26 }
 0x716   :  { %v1627_v6 = vpop.eup %1626 }
 0x717   :  { %v910_v4 = vmul.f32 %v1627_v6, %v1277_v29  ;;  %p1649_p3 = por %p1648_p2, %p1647_p1 }
 0x719   :  { %v917_v5 = vsel %vm228_vm2, %v910_v4, 0.0  ;;  %p1650_p4 = pnand %p1649_p3, %p1643_p0 }
 0x71a   :  { %918 = vadd.xlane.f32.xlu1 %v917_v5 }
 0x79b   :  { %v916_v29 = vpop.xlane.xlu0 %915 }
 0x79c   :  { %v928_v30 = vrot.slane %v916_v29, 4 }
 0x79e   :  { %v929_v32 = vadd.f32 %v928_v30, %v916_v29  ;;  %v1552_v29 = vpack.c.bf16 %v1105_v28, %v1104_v25 }
 0x7a0   :  { %v930_v33 = vrot.slane %v929_v32, 2  ;;  %1553 = vmatpush3.bf16.msra.mxu1 %v1552_v29 }
 0x7a2   :  { %v931_v35 = vadd.f32 %v930_v33, %v929_v32 }
 0x7a4   :  { %v932_v39 = vrot.slane %v931_v35, 1 }
 0x7a6   :  { %v933_v43 = vadd.f32 %v932_v39, %v931_v35 }
 0x7a7   :  { %v919_v38 = vpop.xlane.xlu1 %918 }
 0x7a8   :  { %v935_v40 = vrot.slane %v919_v38, 4  ;;  %v934_v47 = vmul.f32 0.125, %v933_v43 }
 0x7aa   :  { %v936_v42 = vadd.f32 %v935_v40, %v919_v38  ;;  %v942_v51 = vmax.f32 %v927_v49, %v934_v47 }
 0x7ac   :  { %v937_v44 = vrot.slane %v936_v42, 2 }
 0x7ae   :  { %v938_v46 = vadd.f32 %v937_v44, %v936_v42 }
 0x7b0   :  { %v939_v48 = vrot.slane %v938_v46, 1 }
 0x7b2   :  { %v940_v50 = vadd.f32 %v939_v48, %v938_v46 }
 0x7b4   :  { %v941_v52 = vmul.f32 0.125, %v940_v50 }
 0x7b6   :  { %v943_v53 = vmax.f32 %v942_v51, %v941_v52 }
 0x7b8   :  { %v944_v54 = vsub.f32 %v927_v49, %v943_v53  ;;  %v947_v55 = vsub.f32 %v934_v47, %v943_v53  ;;  %v950_v56 = vsub.f32 %v941_v52, %v943_v53 }
 0x7ba   :  { %v945_v57 = vmul.f32 1.442695, %v944_v54  ;;  %v948_v58 = vmul.f32 1.442695, %v947_v55  ;;  %v951_v59 = vmul.f32 1.442695, %v950_v56 }
 0x7bc   :  { %1628 = vpow2.f32 %v945_v57 }
 0x7bd   :  { %1630 = vpow2.f32 %v948_v58 }
 0x7be   :  { %1632 = vpow2.f32 %v951_v59 }
 0x7c6   :  { %v1629_v60 = vpop.eup %1628 }
 0x7c7   :  { %v1631_v61 = vpop.eup %1630 }
 0x7c8   :  { %v953_v62 = vadd.f32 %v1631_v61, %v1629_v60  ;;  %v1633_v63 = vpop.eup %1632 }
 0x7ca   :  { %v954_v0 = vadd.f32 %v1633_v63, %v953_v62 }
 0x7cc   :  { %1634 = vrcp.f32 %v954_v0 }
 0x7d6   :  { %v1635_v1 = vpop.eup %1634 }
 0x7d7   :  { %v959_v2 = vmul.f32 %v1635_v1, %v1633_v63  ;;  %v958_v6 = vmul.f32 %v1635_v1, %v1631_v61  ;;  %v957_v4 = vmul.f32 %v1635_v1, %v1629_v60 }
 0x7d9   :  { %v962_v5 = vmul.f32 %v959_v2, %v2005_v36  ;;  %v961_v7 = vmul.f32 %v958_v6, %v1997_v26  ;;  %v1188_v8 = vsel %vm1187_vm10, %v957_v4, %v958_v6  ;;  %v960_v10 = vmul.f32 %v957_v4, %v1956_v15  ;;  %v1278_v26 = vld [vmem:[%s2092_s19] ss:$0 sm:$0xff] }
 0x7da   :  { %v1190_v9 = vsel %vm1189_vm11, %v1188_v8, %v959_v2 }
 0x7db   :  { %968 = vrot.lane.b32.xlu1 %v962_v5, %s1724_s20  ;;  %964 = vrot.lane.b32.xlu0 %v961_v7, %s1725_s27  ;;  %1192 = vst.msk [vmem:[#allocation4] sm:$0x1] %vm1191_vm12, %v1190_v9 }
 0x84d   :  { %v969_v11 = vpop.permute.xlu1 %968  ;;  %v965_v12 = vpop.permute.xlu0 %964 }
 0x84e   :  { %v971_v13 = vsel %vm228_vm2, %v960_v10, %v965_v12 }
 0x84f   :  { %v972_v36 = vsel %vm154_vm1, %v971_v13, %v969_v11 }
 0x850   :  { %1466 = vmatmul.mubr.msk.f32.vlgmr.msra.gmra.mrb[6].mxu0 %vm992_vm13, %v972_v36 }
 0x923   :  { %v1062_v14 = vpop.f32.mrb[6].mxu0 }
 0x924   :  { %v1063_v16 = vadd.f32 %v1278_v26, %v1062_v14  ;;  %v1467_v17 = vpop.f32.mrb[7].mxu0 }
 0x926   :  { %v1068_v18 = vsel %vm228_vm2, %v1063_v16, 0.0 }
 0x927   :  { %1069 = vadd.xlane.f32.xlu1 %v1068_v18 }
 0x9b4   :  { %v1070_v15 = vpop.xlane.xlu1 %1069 }
 0x9b5   :  { %v1071_v19 = vmul.f32 0.03125, %v1070_v15 }
 0x9b7   :  { %v1072_v20 = vsub.f32 %v1063_v16, %v1071_v19 }
 0x9b9   :  { %v1073_v21 = vmul.f32 %v1072_v20, %v1072_v20 }
 0x9bb   :  { %v1074_v22 = vsel %vm228_vm2, %v1073_v21, 0.0 }
 0x9bc   :  { %1075 = vadd.xlane.f32.xlu0 %v1074_v22 }
 0xa49   :  { %v1076_v30 = vpop.xlane.xlu0 %1075 }
 0xa4a   :  { %v1077_v31 = vmul.f32 0.03125, %v1076_v30 }
 0xa4c   :  { %v1078_v32 = vadd.f32 1e-05, %v1077_v31 }
 0xa4e   :  { %1636 = vrsqrt.f32 %v1078_v32 }
 0xa58   :  { %v1637_v33 = vpop.eup %1636 }
 0xa59   :  { %v1080_v35 = vmul.f32 %v1637_v33, %v1072_v20 }
 0xa5b   :  { %v1087_v38 = vmul.f32 %v1280_v34, %v1080_v35 }
 0xa5d   :  { %v1094_v39 = vadd.f32 %v1281_v37, %v1087_v38 }
 0xa5f   :  { %v1282_v40 = vmul.f32 -1.442695, %v1094_v39 }
 0xa61   :  { %1638 = vpow2.f32 %v1282_v40 }
 0xa6b   :  { %v1639_v41 = vpop.eup %1638 }
 0xa6c   :  { %v1098_v42 = vadd.f32 1.0, %v1639_v41 }
 0xa6e   :  { %1640 = vrcp.f32 %v1098_v42 }
 0xa78   :  { %v1641_v43 = vpop.eup %1640 }
 0xa79   :  { %v1101_v44 = vmul.f32 %v1641_v43, %v1094_v39 }
 0xa7b   :  { %1477 = vmatmul.mubr.msk.f32.vlgmr.msra.gmra.mrb[12].mxu1 %vm228_vm2, %v1101_v44 }
 0xa7c   :  { %1653 = shalt.err (!%p1650_p4)
}
 0xa7d   :  { %s1654_s1 = scalar_lea.hbm %s1891_s30, 16 }
 0xa7e   :  { %p1655_p5 = scmp.ne.s32.totalorder %s1891_s30, %s1654_s1  ;;  %p1658_p6 = scmp.lt.u32.totalorder %s1654_s1, %s1891_s30 }
 0xa80   :  { %p1660_p7 = pnand %p1658_p6, %p1655_p5 }
 0xa82   :  { %1663 = shalt.err (!%p1660_p7)
}
 0xa83   :  { %1212 = dma.vmem_to_hbm [thread:$0]  %s1210_s23, 16, %s1891_s30, [#allocation5]   ;;  %v1283_v3 = vld [vmem:[%s1881_s6] ss:$0 sm:$0xff] }
 0xa84   :  { %s1727_s2 = smov [#allocation2]  }
 0xa85   :  { %s1199_s7 = sshll.u32 %s1727_s2, 4  ;;  %s1200_s7 = int_to_ptr.vmem [resolvable:$true] %s1199_s7 }
 0xa86   :  { %s1664_s10 = scalar_lea.vmem %s1200_s7, 128  ;;  %p1669_p9 = scmp.lt.s32.totalorder %s1200_s7, %s1200_s7 }
 0xa87   :  { %p1665_p8 = scmp.ne.s32.totalorder %s1200_s7, %s1664_s10  ;;  %p1670_p10 = scmp.lt.s32.totalorder %s1664_s10, %s1664_s10 }
 0xa89   :  { %p1671_p11 = por %p1670_p10, %p1669_p9 }
 0xa8b   :  { %p1672_p12 = pnand %p1671_p11, %p1665_p8 }
 0xb4e   :  { %v1182_v45 = vpop.f32.mrb[12].mxu1 }
 0xb4f   :  { %v1183_v46 = vadd.f32 %v1283_v3, %v1182_v45  ;;  %v1478_v47 = vpop.f32.mrb[13].mxu1 }
 0xb51   :  { %1186 = vst.msk [vmem:[#allocation2] sm:$0xff] %vm228_vm2, %v1183_v46 }
 0xb52   :  { %1675 = shalt.err (!%p1672_p12)
}
 0xb53   :  { %s1676_s30 = scalar_lea.hbm %s1886_s12, 128 }
 0xb54   :  { %p1677_p13 = scmp.ne.s32.totalorder %s1886_s12, %s1676_s30  ;;  %p1680_p0 = scmp.lt.u32.totalorder %s1676_s30, %s1886_s12 }
 0xb56   :  { %p1682_p1 = pnand %p1680_p0, %p1677_p13 }
 0xb58   :  { %1685 = shalt.err (!%p1682_p1)
}
 0xb59   :  { %1202 = dma.vmem_to_hbm [thread:$0]  %s1200_s7, 128, %s1886_s12, [#allocation3]  }
 0xb5a   :  { %1686 = dma.done.wait [#allocation3], 128  }
 0xb5b   :  { %1687 = vsyncadd [#allocation3], 4294967168 }
 0xb5c   :  { %1688 = dma.done.wait [#allocation5], 16  }
 0xb5d   :  { %1689 = vsyncadd [#allocation5], 4294967280 }
 0xb5e   :  { %1219 = vsyncpa [#allocation3], 1 }
 0xb5f   :  { %1220 = vsyncpa [#allocation5], 1 }

</bundles_post_ra>
